<compile_context>
chip_gen: v7x
topology: tpu7x:2x2x1
jax: 0.10.0
libtpu: 0.0.40
codegen_flags: <defaults>
</compile_context>

<pallas_src>
import functools

import jax
import jax.numpy as jnp
from jax.experimental import pallas as pl
from jax.experimental.pallas import tpu as pltpu


def _distill_kernel(labels_ref, student_ref, teacher_ref, sfts_ref, tfts_ref,
                    out_ref, tot_ref, *, temperature, ce_weight, cl_weight,
                    kernel_mul, kernel_num, batch):
    s = student_ref[...].astype(jnp.float32)   # (B, C)
    t = teacher_ref[...].astype(jnp.float32)   # (B, C)
    b, c = s.shape

    # --- CE terms without materializing log-softmax matrices ----------------
    # ce_loss  = mean( lse(t) - t_shift[label] )
    # ce_loss1 = mean( lse(s) - sum(soft * s_shift) )    (sum(soft, 1) == 1)
    t_shift = t - jnp.max(t, axis=1, keepdims=True)                      # (B, C)
    lse_t = jnp.log(jnp.sum(jnp.exp(t_shift), axis=1, keepdims=True))    # (B, 1)
    col = jax.lax.broadcasted_iota(jnp.int32, (b, c), 1)
    label_logit = jnp.sum(jnp.where(col == labels_ref[...], t_shift, 0.0),
                          axis=1, keepdims=True)                         # (B, 1)

    # soft labels = softmax(teacher / T); reuse t_shift (T > 0).
    tt_exp = jnp.exp(t_shift * (1.0 / temperature))                      # (B, C)
    inv_denom = 1.0 / jnp.sum(tt_exp, axis=1, keepdims=True)             # (B, 1)

    s_shift = s - jnp.max(s, axis=1, keepdims=True)
    lse_s = jnp.log(jnp.sum(jnp.exp(s_shift), axis=1, keepdims=True))    # (B, 1)
    soft_dot = jnp.sum(tt_exp * s_shift, axis=1, keepdims=True) * inv_denom

    # One fused (B,1)->scalar reduction for ce_loss + ce_weight*ce_loss1.
    ce_terms = jnp.mean((lse_t - label_logit) + ce_weight * (lse_s - soft_dot))

    # --- MMD via a single Gram matmul on staged [S; T] -----------------------
    tot_ref[pl.ds(0, batch), :] = sfts_ref[...]
    tot_ref[pl.ds(batch, batch), :] = tfts_ref[...]
    tot = tot_ref[...]                                  # (2B, D) native dtype
    n = 2 * batch

    contract = (((1,), (1,)), ((), ()))                 # X @ X^T
    g = jax.lax.dot_general(tot, tot, contract,
                            preferred_element_type=jnp.float32)  # (2B, 2B) f32

    # Squared norms straight off the Gram diagonal (no O(N*D) elementwise).
    eye = (jax.lax.broadcasted_iota(jnp.int32, (n, n), 0) ==
           jax.lax.broadcasted_iota(jnp.int32, (n, n), 1))
    diag = jnp.where(eye, g, 0.0)
    sq_col = jnp.sum(diag, axis=1, keepdims=True)       # (2B, 1)
    sq_row = jnp.sum(diag, axis=0, keepdims=True)       # (1, 2B)

    # Diagonal is exactly zero (g_ii + g_ii - 2 g_ii); clamp guards the rest.
    l2 = jnp.maximum(sq_col + sq_row - 2.0 * g, 0.0)    # (2B, 2B)

    # Bandwidth: ONE full-matrix reduction.  Smallest RBF scale directly:
    #   scale_min = 1 / (bandwidth * mul^(K-1)),
    #   bandwidth = l2_sum / (n^2 - n) / mul^(K//2).
    l2_sum = jnp.sum(l2)
    coeff = float(n * n - n) * (kernel_mul ** (kernel_num // 2 - (kernel_num - 1)))
    scale_min = coeff / l2_sum      # NaN if all rows identical (same as ref)

    base = jnp.exp(l2 * (-scale_min))
    if kernel_mul == 2.0:
        # Repeated squaring: remaining kernels are base^2, ^4, ^8, ^16 (VPU).
        ksum = base
        p = base
        for _ in range(kernel_num - 1):
            p = p * p
            ksum = ksum + p
    else:
        # Generic fallback: one exp per scale.
        ksum = base
        for i in range(1, kernel_num):
            ksum = ksum + jnp.exp(l2 * (-(scale_min * (kernel_mul ** i))))

    # mean(XX + YY - XY - YX) == signed full-matrix sum / B^2  (ONE reduction).
    ri = jax.lax.broadcasted_iota(jnp.int32, (n, 1), 0)
    ci = jax.lax.broadcasted_iota(jnp.int32, (1, n), 1)
    sign = (jnp.where(ri < batch, 1.0, -1.0) *
            jnp.where(ci < batch, 1.0, -1.0))           # (2B, 2B)
    mmd = jnp.sum(ksum * sign) / float(batch * batch)

    out_ref[0, 0] = ce_terms + cl_weight * mmd


def distillation_loss(student_outputs, teacher_outputs, labels,
                      student_fts, teacher_fts, *, temperature=5.0,
                      ce_weight=1.0, cl_weight=1.0, kernel_mul=2.0,
                      kernel_num=5):
    b, c = student_outputs.shape
    d = student_fts.shape[1]
    # Tiny (B, 1) int32 label column instead of a (B, C) one-hot matrix.
    labels2d = labels.astype(jnp.int32).reshape(b, 1)

    kernel = functools.partial(
        _distill_kernel,
        temperature=float(temperature), ce_weight=float(ce_weight),
        cl_weight=float(cl_weight), kernel_mul=float(kernel_mul),
        kernel_num=int(kernel_num), batch=int(b))

    vmem = pl.BlockSpec(memory_space=pltpu.MemorySpace.VMEM)
    smem = pl.BlockSpec(memory_space=pltpu.MemorySpace.SMEM)
    # TODO(synk): for large B / C (and v7x megacore), grid the CE terms over
    # batch tiles and the MMD distance/kernel work over 2D tile pairs with
    # "parallel" axes; bandwidth's global dependency forces a two-pass
    # structure (pass 1: l2 tile sums, pass 2: kernel sums) or a second
    # pallas_call.  At the shapes exercised here everything is one tile.
    out = pl.pallas_call(
        kernel,
        out_shape=jax.ShapeDtypeStruct((1, 1), jnp.float32),
        in_specs=[vmem, vmem, vmem, vmem, vmem],
        out_specs=smem,
        scratch_shapes=[pltpu.VMEM((2 * b, d), student_fts.dtype)],
        compiler_params=pltpu.CompilerParams(
            vmem_limit_bytes=48 * 1024 * 1024),  # v5e default is only 16 MiB
    )(labels2d, student_outputs, teacher_outputs, student_fts, teacher_fts)
    return out[0, 0]


def _reference(student_outputs, teacher_outputs, labels, student_fts, teacher_fts,
               temperature=5.0, ce_weight=1.0, cl_weight=1.0, kernel_mul=2.0,
               kernel_num=5):
    def log_softmax(x):
        x = x - jnp.max(x, axis=1, keepdims=True)
        return x - jnp.log(jnp.sum(jnp.exp(x), axis=1, keepdims=True))

    onehot = jax.nn.one_hot(labels, teacher_outputs.shape[1], dtype=jnp.float32)
    ce = -jnp.mean(jnp.sum(onehot * log_softmax(teacher_outputs), axis=1))
    soft = jax.nn.softmax(teacher_outputs / temperature, axis=1)
    ce1 = -jnp.mean(jnp.sum(soft * log_softmax(student_outputs), axis=1))
    total = jnp.concatenate([student_fts, teacher_fts], axis=0)
    n = total.shape[0]
    diff = total[None, :, :] - total[:, None, :]
    l2 = jnp.sum(diff * diff, axis=2)
    bw = jnp.sum(l2) / (n * n - n)
    bw = bw / (kernel_mul ** (kernel_num // 2))
    kmat = sum(jnp.exp(-l2 / (bw * kernel_mul ** i)) for i in range(kernel_num))
    b = student_fts.shape[0]
    xx = kmat[:b, :b]; yy = kmat[b:, b:]; xy = kmat[:b, b:]; yx = kmat[b:, :b]
    mmd = jnp.mean(xx + yy - xy - yx)
    return ce + ce_weight * ce1 + cl_weight * mmd


if __name__ == "__main__":
    key = jax.random.PRNGKey(0)
    B, C, D = 8, 16, 32
    k1, k2, k3, k4, k5 = jax.random.split(key, 5)
    student_outputs = jax.random.normal(k1, (B, C), dtype=jnp.float32)
    teacher_outputs = jax.random.normal(k2, (B, C), dtype=jnp.float32)
    labels = jax.random.randint(k3, (B,), 0, C)
    student_fts = jax.random.normal(k4, (B, D), dtype=jnp.float32)
    teacher_fts = jax.random.normal(k5, (B, D), dtype=jnp.float32)

    loss = distillation_loss(student_outputs, teacher_outputs, labels,
                             student_fts, teacher_fts)
    loss = jax.block_until_ready(loss)

    ref = _reference(student_outputs, teacher_outputs, labels,
                     student_fts, teacher_fts)
    assert jnp.allclose(loss, ref, rtol=1e-4, atol=1e-4), (loss, ref)
    print("KERNEL_OK")
</pallas_src>

<mosaic_0001>
module attributes {stable_mosaic.version = 11 : i64} {
  func.func @_distill_kernel(%arg0: memref<8x1xi32, #tpu.memory_space<vmem>>, %arg1: memref<8x16xf32, #tpu.memory_space<vmem>>, %arg2: memref<8x16xf32, #tpu.memory_space<vmem>>, %arg3: memref<8x32xf32, #tpu.memory_space<vmem>>, %arg4: memref<8x32xf32, #tpu.memory_space<vmem>>, %arg5: memref<1x1xf32, #tpu.memory_space<smem>>, %arg6: memref<16x32xf32, #tpu.memory_space<vmem>>) attributes {dimension_semantics = [], scalar_prefetch = 0 : i64, scratch_operands = 1 : i64, tpu.core_type = #tpu.core_type<tc>} {
    %c0 = arith.constant 0 : index
    %c0_0 = arith.constant 0 : index
    %0 = vector.load %arg1[%c0, %c0_0] : memref<8x16xf32, #tpu.memory_space<vmem>>, vector<8x16xf32>
    %c0_1 = arith.constant 0 : index
    %c0_2 = arith.constant 0 : index
    %1 = vector.load %arg2[%c0_1, %c0_2] : memref<8x16xf32, #tpu.memory_space<vmem>>, vector<8x16xf32>
    %cst = arith.constant dense<0xFF800000> : vector<8xf32>
    %2 = vector.multi_reduction <maximumf>, %1, %cst [1] : vector<8x16xf32> to vector<8xf32>
    %3 = vector.shape_cast %2 : vector<8xf32> to vector<8x1xf32>
    %4 = vector.broadcast %3 : vector<8x1xf32> to vector<8x16xf32>
    %5 = arith.subf %1, %4 : vector<8x16xf32>
    %6 = math.exp %5 : vector<8x16xf32>
    %cst_3 = arith.constant dense<0.000000e+00> : vector<8xf32>
    %7 = vector.multi_reduction <add>, %6, %cst_3 [1] : vector<8x16xf32> to vector<8xf32>
    %8 = vector.shape_cast %7 : vector<8xf32> to vector<8x1xf32>
    %9 = math.log %8 : vector<8x1xf32>
    %10 = tpu.iota {dimensions = array<i32: 1>} : vector<8x16xi32>
    %c0_4 = arith.constant 0 : index
    %c0_5 = arith.constant 0 : index
    %11 = vector.load %arg0[%c0_4, %c0_5] : memref<8x1xi32, #tpu.memory_space<vmem>>, vector<8x1xi32>
    %12 = vector.broadcast %11 : vector<8x1xi32> to vector<8x16xi32>
    %13 = arith.cmpi eq, %10, %12 : vector<8x16xi32>
    %cst_6 = arith.constant 0.000000e+00 : f32
    %14 = vector.broadcast %cst_6 : f32 to vector<8x16xf32>
    %15 = arith.select %13, %5, %14 : vector<8x16xi1>, vector<8x16xf32>
    %cst_7 = arith.constant dense<0.000000e+00> : vector<8xf32>
    %16 = vector.multi_reduction <add>, %15, %cst_7 [1] : vector<8x16xf32> to vector<8xf32>
    %17 = vector.shape_cast %16 : vector<8xf32> to vector<8x1xf32>
    %cst_8 = arith.constant 2.000000e-01 : f32
    %18 = vector.broadcast %cst_8 : f32 to vector<8x16xf32>
    %19 = arith.mulf %5, %18 : vector<8x16xf32>
    %20 = math.exp %19 : vector<8x16xf32>
    %cst_9 = arith.constant dense<0.000000e+00> : vector<8xf32>
    %21 = vector.multi_reduction <add>, %20, %cst_9 [1] : vector<8x16xf32> to vector<8xf32>
    %22 = vector.shape_cast %21 : vector<8xf32> to vector<8x1xf32>
    %cst_10 = arith.constant 1.000000e+00 : f32
    %23 = vector.broadcast %cst_10 : f32 to vector<8x1xf32>
    %24 = arith.divf %23, %22 : vector<8x1xf32>
    %cst_11 = arith.constant dense<0xFF800000> : vector<8xf32>
    %25 = vector.multi_reduction <maximumf>, %0, %cst_11 [1] : vector<8x16xf32> to vector<8xf32>
    %26 = vector.shape_cast %25 : vector<8xf32> to vector<8x1xf32>
    %27 = vector.broadcast %26 : vector<8x1xf32> to vector<8x16xf32>
    %28 = arith.subf %0, %27 : vector<8x16xf32>
    %29 = math.exp %28 : vector<8x16xf32>
    %cst_12 = arith.constant dense<0.000000e+00> : vector<8xf32>
    %30 = vector.multi_reduction <add>, %29, %cst_12 [1] : vector<8x16xf32> to vector<8xf32>
    %31 = vector.shape_cast %30 : vector<8xf32> to vector<8x1xf32>
    %32 = math.log %31 : vector<8x1xf32>
    %33 = arith.mulf %20, %28 : vector<8x16xf32>
    %cst_13 = arith.constant dense<0.000000e+00> : vector<8xf32>
    %34 = vector.multi_reduction <add>, %33, %cst_13 [1] : vector<8x16xf32> to vector<8xf32>
    %35 = vector.shape_cast %34 : vector<8xf32> to vector<8x1xf32>
    %36 = arith.mulf %35, %24 : vector<8x1xf32>
    %37 = arith.subf %9, %17 : vector<8x1xf32>
    %38 = arith.subf %32, %36 : vector<8x1xf32>
    %cst_14 = arith.constant 1.000000e+00 : f32
    %39 = vector.broadcast %cst_14 : f32 to vector<8x1xf32>
    %40 = arith.mulf %39, %38 : vector<8x1xf32>
    %41 = arith.addf %37, %40 : vector<8x1xf32>
    %42 = vector.shape_cast %41 : vector<8x1xf32> to vector<1x8x1xf32>
    %cst_15 = arith.constant dense<0.000000e+00> : vector<1xf32>
    %43 = vector.multi_reduction <add>, %42, %cst_15 [1, 2] : vector<1x8x1xf32> to vector<1xf32>
    %44 = vector.shape_cast %43 : vector<1xf32> to vector<1x1x1xf32>
    %45 = vector.extract %44[0, 0, 0] : f32 from vector<1x1x1xf32>
    %cst_16 = arith.constant 8.000000e+00 : f32
    %46 = arith.divf %45, %cst_16 : f32
    %c0_17 = arith.constant 0 : index
    %c0_18 = arith.constant 0 : index
    %47 = vector.load %arg3[%c0_17, %c0_18] : memref<8x32xf32, #tpu.memory_space<vmem>>, vector<8x32xf32>
    %c0_19 = arith.constant 0 : index
    %c0_20 = arith.constant 0 : index
    %48 = vector.load %arg6[%c0_19, %c0_20] : memref<16x32xf32, #tpu.memory_space<vmem>>, vector<8x32xf32>
    tpu.vector_store %arg6[%c0_19, %c0_20], %47 {strides = array<i32>} : memref<16x32xf32, #tpu.memory_space<vmem>>, vector<8x32xf32>,
    %c0_21 = arith.constant 0 : index
    %c0_22 = arith.constant 0 : index
    %49 = vector.load %arg4[%c0_21, %c0_22] : memref<8x32xf32, #tpu.memory_space<vmem>>, vector<8x32xf32>
    %c8 = arith.constant 8 : index
    %c0_23 = arith.constant 0 : index
    %50 = vector.load %arg6[%c8, %c0_23] : memref<16x32xf32, #tpu.memory_space<vmem>>, vector<8x32xf32>
    tpu.vector_store %arg6[%c8, %c0_23], %49 {strides = array<i32>} : memref<16x32xf32, #tpu.memory_space<vmem>>, vector<8x32xf32>,
    %c0_24 = arith.constant 0 : index
    %c0_25 = arith.constant 0 : index
    %51 = vector.load %arg6[%c0_24, %c0_25] : memref<16x32xf32, #tpu.memory_space<vmem>>, vector<16x32xf32>
    %cst_26 = arith.constant dense<0.000000e+00> : vector<16x16xf32>
    %52 = tpu.matmul %51, %51, %cst_26 {dimension_numbers = #tpu.dot_dimension_numbers<[1], [1], [0], [0], [0, 0, 1, 0], [], []>} : vector<16x32xf32>, vector<16x32xf32>, vector<16x16xf32> -> vector<16x16xf32>
    %53 = tpu.iota {dimensions = array<i32: 0>} : vector<16x16xi32>
    %54 = tpu.iota {dimensions = array<i32: 1>} : vector<16x16xi32>
    %55 = arith.cmpi eq, %53, %54 : vector<16x16xi32>
    %cst_27 = arith.constant 0.000000e+00 : f32
    %56 = vector.broadcast %cst_27 : f32 to vector<16x16xf32>
    %57 = arith.select %55, %52, %56 : vector<16x16xi1>, vector<16x16xf32>
    %cst_28 = arith.constant dense<0.000000e+00> : vector<16xf32>
    %58 = vector.multi_reduction <add>, %57, %cst_28 [1] : vector<16x16xf32> to vector<16xf32>
    %59 = vector.shape_cast %58 : vector<16xf32> to vector<16x1xf32>
    %cst_29 = arith.constant dense<0.000000e+00> : vector<16xf32>
    %60 = vector.multi_reduction <add>, %57, %cst_29 [0] : vector<16x16xf32> to vector<16xf32>
    %61 = vector.shape_cast %60 : vector<16xf32> to vector<1x16xf32>
    %62 = vector.broadcast %59 : vector<16x1xf32> to vector<16x16xf32>
    %63 = vector.broadcast %61 : vector<1x16xf32> to vector<16x16xf32>
    %64 = arith.addf %62, %63 : vector<16x16xf32>
    %cst_30 = arith.constant 2.000000e+00 : f32
    %65 = vector.broadcast %cst_30 : f32 to vector<16x16xf32>
    %66 = arith.mulf %65, %52 : vector<16x16xf32>
    %67 = arith.subf %64, %66 : vector<16x16xf32>
    %cst_31 = arith.constant 0.000000e+00 : f32
    %68 = vector.broadcast %cst_31 : f32 to vector<16x16xf32>
    %69 = arith.maximumf %67, %68 : vector<16x16xf32>
    %70 = vector.shape_cast %69 : vector<16x16xf32> to vector<1x16x16xf32>
    %cst_32 = arith.constant dense<0.000000e+00> : vector<1xf32>
    %71 = vector.multi_reduction <add>, %70, %cst_32 [1, 2] : vector<1x16x16xf32> to vector<1xf32>
    %72 = vector.shape_cast %71 : vector<1xf32> to vector<1x1x1xf32>
    %73 = vector.extract %72[0, 0, 0] : f32 from vector<1x1x1xf32>
    %cst_33 = arith.constant 6.000000e+01 : f32
    %74 = arith.divf %cst_33, %73 : f32
    %cst_34 = arith.constant 0.000000e+00 : f32
    %75 = arith.subf %cst_34, %74 : f32
    %76 = vector.broadcast %75 : f32 to vector<16x16xf32>
    %77 = arith.mulf %69, %76 : vector<16x16xf32>
    %78 = math.exp %77 : vector<16x16xf32>
    %79 = arith.mulf %78, %78 : vector<16x16xf32>
    %80 = arith.addf %78, %79 : vector<16x16xf32>
    %81 = arith.mulf %79, %79 : vector<16x16xf32>
    %82 = arith.addf %80, %81 : vector<16x16xf32>
    %83 = arith.mulf %81, %81 : vector<16x16xf32>
    %84 = arith.addf %82, %83 : vector<16x16xf32>
    %85 = arith.mulf %83, %83 : vector<16x16xf32>
    %86 = arith.addf %84, %85 : vector<16x16xf32>
    %87 = tpu.iota {dimensions = array<i32: 0>} : vector<16x1xi32>
    %88 = tpu.iota {dimensions = array<i32: 1>} : vector<1x16xi32>
    %c8_i32 = arith.constant 8 : i32
    %89 = vector.broadcast %c8_i32 : i32 to vector<16x1xi32>
    %90 = arith.cmpi slt, %87, %89 : vector<16x1xi32>
    %cst_35 = arith.constant 1.000000e+00 : f32
    %cst_36 = arith.constant -1.000000e+00 : f32
    %91 = vector.broadcast %cst_35 : f32 to vector<16x1xf32>
    %92 = vector.broadcast %cst_36 : f32 to vector<16x1xf32>
    %93 = arith.select %90, %91, %92 : vector<16x1xi1>, vector<16x1xf32>
    %c8_i32_37 = arith.constant 8 : i32
    %94 = vector.broadcast %c8_i32_37 : i32 to vector<1x16xi32>
    %95 = arith.cmpi slt, %88, %94 : vector<1x16xi32>
    %cst_38 = arith.constant 1.000000e+00 : f32
    %cst_39 = arith.constant -1.000000e+00 : f32
    %96 = vector.broadcast %cst_38 : f32 to vector<1x16xf32>
    %97 = vector.broadcast %cst_39 : f32 to vector<1x16xf32>
    %98 = arith.select %95, %96, %97 : vector<1x16xi1>, vector<1x16xf32>
    %99 = vector.broadcast %93 : vector<16x1xf32> to vector<16x16xf32>
    %100 = vector.broadcast %98 : vector<1x16xf32> to vector<16x16xf32>
    %101 = arith.mulf %99, %100 : vector<16x16xf32>
    %102 = arith.mulf %86, %101 : vector<16x16xf32>
    %103 = vector.shape_cast %102 : vector<16x16xf32> to vector<1x16x16xf32>
    %cst_40 = arith.constant dense<0.000000e+00> : vector<1xf32>
    %104 = vector.multi_reduction <add>, %103, %cst_40 [1, 2] : vector<1x16x16xf32> to vector<1xf32>
    %105 = vector.shape_cast %104 : vector<1xf32> to vector<1x1x1xf32>
    %106 = vector.extract %105[0, 0, 0] : f32 from vector<1x1x1xf32>
    %cst_41 = arith.constant 6.400000e+01 : f32
    %107 = arith.divf %106, %cst_41 : f32
    %cst_42 = arith.constant 1.000000e+00 : f32
    %108 = arith.mulf %cst_42, %107 : f32
    %109 = arith.addf %46, %108 : f32
    %c0_43 = arith.constant 0 : index
    %c0_44 = arith.constant 0 : index
    %110 = memref.load %arg5[%c0_43, %c0_44] : memref<1x1xf32, #tpu.memory_space<smem>>
    memref.store %109, %arg5[%c0_43, %c0_44] : memref<1x1xf32, #tpu.memory_space<smem>>
    return
  }
}

</mosaic_0001>

<bundles_post_ra>
// kernel: tpu_custom_call.1
= control target key start
LH: loop header
LB: loop body
LE: loop exit
PB: predicated region body
PF: predicated region fallthrough
CT: control target
= control target key end

     0   :  { %10 = vsyncpa [#allocation4], 0  ;;  %s484_s0 = inlined_call_operand.vmem [shape: s32[8,1], index: 0, kind: input, shape index: {}]   ;;  %s485_s1 = inlined_call_operand.vmem [shape: f32[8,16], index: 1, kind: input, shape index: {}]   ;;  %s486_s2 = inlined_call_operand.vmem [shape: f32[8,16], index: 2, kind: input, shape index: {}]   ;;  %s487_s3 = inlined_call_operand.hbm [shape: f32[8,32], index: 3, kind: input, shape index: {}]   ;;  %s488_s4 = inlined_call_operand.vmem [shape: f32[8,32], index: 4, kind: input, shape index: {}]   ;;  %s489_s5 = inlined_call_operand.hbm [shape: f32[1,1], index: 5, kind: output, shape index: {}]  }
   0x1   :  { %11 = vsyncpa [#allocation5], 0  ;;  %s386_s18 = smov [#allocation3]   ;;  %s350_s22 = scalar_lea.hbm %s487_s3, 128 }
   0x2   :  { %s24_s19 = sshll.u32 %s386_s18, 4  ;;  %p351_p0 = scmp.ne.s32.totalorder %s487_s3, %s350_s22  ;;  %s25_s19 = int_to_ptr.vmem [resolvable:$true] %s24_s19 }
   0x3   :  { %p354_p1 = scmp.lt.u32.totalorder %s350_s22, %s487_s3 }
   0x5   :  { %p356_p2 = pnand %p354_p1, %p351_p0 }
   0x7   :  { %359 = shalt.err (!%p356_p2)
}
   0x8   :  { %s360_s27 = scalar_lea.vmem %s25_s19, 128  ;;  %p365_p4 = scmp.lt.s32.totalorder %s25_s19, %s25_s19 }
   0x9   :  { %p361_p3 = scmp.ne.s32.totalorder %s25_s19, %s360_s27  ;;  %p366_p5 = scmp.lt.s32.totalorder %s360_s27, %s360_s27 }
   0xb   :  { %p367_p6 = por %p366_p5, %p365_p4 }
   0xd   :  { %p368_p7 = pnand %p367_p6, %p361_p3 }
   0xf   :  { %371 = shalt.err (!%p368_p7)
}
  0x10   :  { %27 = dma.hbm_to_vmem [thread:$0]  %s487_s3, 128, %s25_s19, [#allocation4]  }
  0x11   :  { %382 = dma.done.wait [#allocation4], 128  }
  0x12   :  { %383 = vsyncadd [#allocation4], 4294967168  ;;  %v387_v0 = vmov 0   ;;  %vm100_vm0 = vcmask 261120   ;;  %vm35_vm1 = vcmask 130048   ;;  %v99_v1 = vld [vmem:[#allocation3] sm:$0xff]  ;;  %v47_v27 = vlaneseq }
  0x13   :  { %330 = vset.pattern.permute.xlu1 %v387_v0  ;;  %331 = vset.pattern.permute.xlu0 %v387_v0  ;;  %v102_v2 = vld [vmem:[%s488_s4] sm:$0xff]  ;;  %101 = vst.msk [vmem:[#allocation2] sm:$0xff] %vm100_vm0, %v99_v1  ;;  %vm313_vm2 = vmpackc.low %vm100_vm0, %vm100_vm0  ;;  %vm85_vm6 = vcmask 7168   ;;  %s372_s19 = scalar_lea.hbm %s489_s5, 16 }
  0x14   :  { %v34_v3 = vld [vmem:[%s486_s2] sm:$0xff]  ;;  %103 = vst.msk [vmem:[#allocation2 + $0x8] sm:$0xff] %vm100_vm0, %v102_v2  ;;  %v188_v28 = vshrl.u32 %v47_v27, 7  ;;  %v456_v30 = vand.u32 127, %v47_v27  ;;  %p373_p8 = scmp.ne.s32.totalorder %s489_s5, %s372_s19  ;;  %p376_p9 = scmp.lt.u32.totalorder %s372_s19, %s489_s5 }
  0x15   :  { %v36_v4 = vsel %vm35_vm1, %v34_v3, -inf  ;;  %v33_v5 = vld [vmem:[%s485_s1] sm:$0xff] }
  0x16   :  { %v49_v6 = vld [vmem:[%s484_s0] sm:$0xff]  ;;  %37 = vmax.xlane.f32.xlu0 %v36_v4  ;;  %v66_v7 = vsel %vm35_vm1, %v33_v5, -inf  ;;  %v189_v29 = vadd.s32 8, %v188_v28  ;;  %vm190_vm4 = vcmp.eq.s32.totalorder %v188_v28, %v456_v30  ;;  %vm259_vm7 = vcmp.lt.s32.totalorder %v456_v30, 8  ;;  %p378_p10 = pnand %p376_p9, %p373_p8 }
  0x17   :  { %51 = vperm.xlu1 %330, %v49_v6  }
  0x18   :  { %vm191_vm3 = vcmp.eq.s32.totalorder %v189_v29, %v456_v30 }
  0x1a   :  { %67 = vmax.xlane.f32.xlu0 %v66_v7  ;;  %v104_v8 = vld [vmem:[#allocation2] sm:$0xff] }
  0x1b   :  { %v105_v9 = vld [vmem:[#allocation2 + $0x8] sm:$0xff]  ;;  %309 = vmatprep.mubr.msk.f32.mxu0 %vm100_vm0, %v104_v8 }
  0x1c   :  { %v312_v10 = vpack.c.bf16 %v105_v9, %v104_v8 }
  0x1e   :  { %314 = vmatprep.subr.msk.bf16.mxu0 %vm313_vm2, %v312_v10 }
  0x1f   :  { %317 = vmatpush3.bf16.xpose.msk.msra.mxu0 %vm313_vm2, %v312_v10 }
  0x26   :  { %310 = vmatmul.mubr.msk.f32.vlgmr.msra.gmra.mrb[0].mxu0 %vm100_vm0, %v105_v9 }
  0x96   :  { %v52_v32 = vpop.permute.xlu1 %51 }
  0x97   :  { %vm53_vm5 = vcmp.eq.s32.totalorder %v456_v30, %v52_v32 }
  0xa3   :  { %v38_v11 = vpop.xlane.xlu0 %37 }
  0xa4   :  { %v39_v12 = vsub.f32 %v34_v3, %v38_v11 }
  0xa6   :  { %v40_v13 = vmul.f32 1.442695, %v39_v12  ;;  %v58_v14 = vmul.f32 0.2, %v39_v12  ;;  %v54_v39 = vsel %vm53_vm5, %v39_v12, 0.0 }
  0xa7   :  { %v68_v15 = vpop.xlane.xlu0 %67  ;;  %v55_v40 = vsel %vm35_vm1, %v54_v39, 0.0 }
  0xa8   :  { %332 = vpow2.f32 %v40_v13  ;;  %v59_v16 = vmul.f32 1.442695, %v58_v14  ;;  %v69_v17 = vsub.f32 %v33_v5, %v68_v15 }
  0xaa   :  { %v70_v18 = vmul.f32 1.442695, %v69_v17  ;;  %334 = vpow2.f32 %v59_v16 }
  0xac   :  { %336 = vpow2.f32 %v70_v18 }
  0xb2   :  { %v333_v19 = vpop.eup %332 }
  0xb3   :  { %v42_v20 = vsel %vm35_vm1, %v333_v19, 0.0 }
  0xb4   :  { %43 = vadd.xlane.f32.xlu1 %v42_v20  ;;  %v335_v21 = vpop.eup %334 }
  0xb5   :  { %v61_v24 = vsel %vm35_vm1, %v335_v21, 0.0  ;;  %v77_v25 = vmul.f32 %v335_v21, %v69_v17 }
  0xb6   :  { %v337_v22 = vpop.eup %336 }
  0xb7   :  { %v72_v23 = vsel %vm35_vm1, %v337_v22, 0.0  ;;  %v78_v26 = vsel %vm35_vm1, %v77_v25, 0.0 }
  0xb8   :  { %73 = vadd.xlane.f32.xlu0 %v72_v23 }
  0xbc   :  { %62 = vadd.xlane.f32.xlu0 %v61_v24 }
  0xc0   :  { %79 = vadd.xlane.f32.xlu0 %v78_v26 }
  0xf9   :  { %v311_v31 = vpop.f32.mrb[0].mxu0 }
  0xfa   :  { %v178_v33 = vpop.f32.mrb[1].mxu0  ;;  %v193_v34 = vsel %vm191_vm3, %v311_v31, 0.0  ;;  %v210_v53 = vmul.f32 2.0, %v311_v31 }
  0xfb   :  { %v192_v35 = vsel %vm190_vm4, %v178_v33, 0.0  ;;  %v197_v36 = vsel %vm35_vm1, %v193_v34, 0.0  ;;  %v209_v59 = vmul.f32 2.0, %v178_v33 }
  0xfc   :  { %198 = vadd.xlane.f32.xlu0 %v197_v36  ;;  %v194_v37 = vsel %vm35_vm1, %v192_v35, 0.0 }
  0xfd   :  { %v200_v38 = vadd.f32 %v197_v36, %v194_v37 }
  0xff   :  { %v201_v41 = vrot.slane %v200_v38, 4 }
 0x100   :  { %195 = vadd.xlane.f32.xlu0 %v194_v37 }
 0x101   :  { %v202_v42 = vadd.f32 %v201_v41, %v200_v38 }
 0x103   :  { %v203_v44 = vrot.slane %v202_v42, 2 }
 0x104   :  { %56 = vadd.xlane.f32.xlu0 %v55_v40 }
 0x105   :  { %v204_v47 = vadd.f32 %v203_v44, %v202_v42 }
 0x107   :  { %v205_v48 = vrot.slane %v204_v47, 1 }
 0x109   :  { %v206_v50 = vadd.f32 %v205_v48, %v204_v47 }
 0x141   :  { %v44_v46 = vpop.xlane.xlu1 %43 }
 0x145   :  { %v74_v43 = vpop.xlane.xlu0 %73 }
 0x146   :  { %338 = vlog2.f32 %v74_v43  ;;  %v388_v43 = vmov -1.0  }
 0x147   :  { %v260_v44 = vsel %vm259_vm7, 1.0, %v388_v43 }
 0x149   :  { %v63_v45 = vpop.xlane.xlu0 %62 }
 0x14a   :  { %340 = vrcp.f32 %v63_v45 }
 0x14b   :  { %342 = vlog2.f32 %v44_v46 }
 0x14d   :  { %v80_v49 = vpop.xlane.xlu0 %79 }
 0x150   :  { %v339_v52 = vpop.eup %338 }
 0x151   :  { %v76_v60 = vmul.f32 0.6931472, %v339_v52 }
 0x154   :  { %v341_v55 = vpop.eup %340 }
 0x155   :  { %v343_v57 = vpop.eup %342  ;;  %v81_v61 = vmul.f32 %v341_v55, %v80_v49 }
 0x156   :  { %v46_v0 = vmul.f32 0.6931472, %v343_v57 }
 0x157   :  { %v83_v2 = vsub.f32 %v76_v60, %v81_v61 }
 0x189   :  { %v199_v51 = vpop.xlane.xlu0 %198 }
 0x18a   :  { %v208_v54 = vadd.f32 %v206_v50, %v199_v51  ;;  %v262_v51 = vmul.f32 -1.0, %v260_v44 }
 0x18c   :  { %v212_v56 = vsub.f32 %v208_v54, %v210_v53 }
 0x18d   :  { %v196_v58 = vpop.xlane.xlu0 %195 }
 0x18e   :  { %v207_v62 = vadd.f32 %v206_v50, %v196_v58  ;;  %v214_v5 = vmax.f32 %v212_v56, 0.0 }
 0x190   :  { %v211_v63 = vsub.f32 %v207_v62, %v209_v59  ;;  %v216_v9 = vsel %vm35_vm1, %v214_v5, 0.0 }
 0x191   :  { %v57_v1 = vpop.xlane.xlu0 %56 }
 0x192   :  { %v213_v3 = vmax.f32 %v211_v63, 0.0  ;;  %v82_v4 = vsub.f32 %v46_v0, %v57_v1 }
 0x194   :  { %v84_v6 = vadd.f32 %v83_v2, %v82_v4  ;;  %v215_v8 = vsel %vm35_vm1, %v213_v3, 0.0 }
 0x195   :  { %v217_v10 = vadd.f32 %v216_v9, %v215_v8 }
 0x196   :  { %v86_v7 = vsel %vm85_vm6, %v84_v6, 0.0 }
 0x197   :  { %87 = vadd.xlane.f32.xlu0 %v86_v7 }
 0x19b   :  { %218 = vadd.xlane.f32.xlu0 %v217_v10 }
 0x224   :  { %v88_v11 = vpop.xlane.xlu0 %87 }
 0x225   :  { %v89_v12 = vrot.slane %v88_v11, 4 }
 0x227   :  { %v90_v13 = vadd.f32 %v89_v12, %v88_v11 }
 0x228   :  { %v219_v14 = vpop.xlane.xlu0 %218 }
 0x229   :  { %v91_v15 = vrot.slane %v90_v13, 2  ;;  %v220_v16 = vrot.slane %v219_v14, 4 }
 0x22b   :  { %v221_v17 = vadd.f32 %v220_v16, %v219_v14  ;;  %v92_v18 = vadd.f32 %v91_v15, %v90_v13 }
 0x22d   :  { %v222_v19 = vrot.slane %v221_v17, 2  ;;  %v93_v20 = vrot.slane %v92_v18, 1 }
 0x22f   :  { %v94_v21 = vadd.f32 %v93_v20, %v92_v18  ;;  %v223_v22 = vadd.f32 %v222_v19, %v221_v17 }
 0x231   :  { %318 = vpush %v94_v21  ;;  %v224_v23 = vrot.slane %v223_v22, 1 }
 0x233   :  { %v225_v24 = vadd.f32 %v224_v23, %v223_v22 }
 0x235   :  { %320 = vpush %v225_v24 }
 0x262   :  { %s466_s0 = spop %318 }
 0x263   :  { %s98_s13 = smul.f32 0.125, %s466_s0 }
 0x266   :  { %s321_s1 = spop %320 }
 0x267   :  { %v227_v25 = vstv %s321_s1 }
 0x268   :  { %344 = vrcp.f32 %v227_v25 }
 0x272   :  { %v345_v26 = vpop.eup %344 }
 0x273   :  { %322 = vpush %v345_v26 }
 0x2a4   :  { %s323_s2 = spop %322 }
 0x2a5   :  { %s230_s4 = smul.f32 60.0, %s323_s2 }
 0x2a7   :  { %s231_s12 = ssub.f32 0.0, %s230_s4 }
 0x2a9   :  { %v232_v27 = vstv %s231_s12 }
 0x2aa   :  { %v233_v28 = vmul.f32 %v232_v27, %v213_v3  ;;  %v234_v29 = vmul.f32 %v232_v27, %v214_v5 }
 0x2ac   :  { %v235_v31 = vmul.f32 1.442695, %v233_v28  ;;  %v237_v32 = vmul.f32 1.442695, %v234_v29 }
 0x2ae   :  { %346 = vpow2.f32 %v235_v31 }
 0x2af   :  { %348 = vpow2.f32 %v237_v32 }
 0x2b8   :  { %v347_v33 = vpop.eup %346 }
 0x2b9   :  { %v349_v34 = vpop.eup %348  ;;  %v239_v35 = vmul.f32 %v347_v33, %v347_v33 }
 0x2ba   :  { %v240_v36 = vmul.f32 %v349_v34, %v349_v34 }
 0x2bb   :  { %v241_v37 = vadd.f32 %v347_v33, %v239_v35  ;;  %v243_v38 = vmul.f32 %v239_v35, %v239_v35 }
 0x2bc   :  { %v242_v39 = vadd.f32 %v349_v34, %v240_v36  ;;  %v244_v40 = vmul.f32 %v240_v36, %v240_v36 }
 0x2bd   :  { %v245_v41 = vadd.f32 %v243_v38, %v241_v37  ;;  %v247_v42 = vmul.f32 %v243_v38, %v243_v38 }
 0x2be   :  { %v246_v45 = vadd.f32 %v244_v40, %v242_v39  ;;  %v248_v46 = vmul.f32 %v244_v40, %v244_v40 }
 0x2bf   :  { %v249_v47 = vadd.f32 %v247_v42, %v245_v41  ;;  %v251_v48 = vmul.f32 %v247_v42, %v247_v42 }
 0x2c0   :  { %v250_v49 = vadd.f32 %v248_v46, %v246_v45  ;;  %v252_v50 = vmul.f32 %v248_v46, %v248_v46 }
 0x2c1   :  { %v253_v52 = vadd.f32 %v251_v48, %v249_v47 }
 0x2c2   :  { %v254_v53 = vadd.f32 %v252_v50, %v250_v49 }
 0x2c3   :  { %v263_v54 = vmul.f32 %v260_v44, %v253_v52 }
 0x2c4   :  { %v264_v30 = vmul.f32 %v262_v51, %v254_v53 }
 0x2c5   :  { %v265_v55 = vsel %vm35_vm1, %v263_v54, 0.0 }
 0x2c6   :  { %v266_v56 = vsel %vm35_vm1, %v264_v30, 0.0 }
 0x2c7   :  { %v267_v57 = vadd.f32 %v266_v56, %v265_v55 }
 0x2c9   :  { %268 = vadd.xlane.f32.xlu0 %v267_v57 }
 0x356   :  { %v269_v58 = vpop.xlane.xlu0 %268 }
 0x357   :  { %v270_v59 = vrot.slane %v269_v58, 4 }
 0x359   :  { %v271_v60 = vadd.f32 %v270_v59, %v269_v58 }
 0x35b   :  { %v272_v61 = vrot.slane %v271_v60, 2 }
 0x35d   :  { %v273_v62 = vadd.f32 %v272_v61, %v271_v60 }
 0x35f   :  { %v274_v63 = vrot.slane %v273_v62, 1 }
 0x361   :  { %v275_v0 = vadd.f32 %v274_v63, %v273_v62 }
 0x363   :  { %324 = vpush %v275_v0 }
 0x394   :  { %s325_s14 = spop %324 }
 0x395   :  { %s279_s15 = smul.f32 0.015625, %s325_s14 }
 0x397   :  { %s280_s16 = sadd.f32 %s279_s15, %s98_s13 }
 0x399   :  { %282 = sst [smem:[#allocation6]] %s280_s16 }
 0x39a   :  { %381 = shalt.err (!%p378_p10)
}
 0x39b   :  { %s389_s24 = smov [#allocation6]  }
 0x39c   :  { %290 = dma.smem_to_hbm %s389_s24, 16, %s489_s5, [#allocation5]  }
 0x39d   :  { %384 = dma.done.wait [#allocation5], 16  }
 0x39e   :  { %385 = vsyncadd [#allocation5], 4294967280 }
 0x39f   :  { %294 = sfence }
 0x3a0   :  { %295 = vsyncpa [#allocation4], 1 }
 0x3a1   :  { %296 = vsyncpa [#allocation5], 1 }

</bundles_post_ra>
